<compile_context>
chip_gen: v7x
topology: tpu7x:2x2x1
jax: 0.10.0
libtpu: 0.0.40
codegen_flags: <defaults>
</compile_context>

<pallas_src>
import functools

import jax
import jax.numpy as jnp
from jax.experimental import pallas as pl
from jax.experimental.pallas import tpu as pltpu


def _round_up(x, m):
    return ((x + m - 1) // m) * m


def _choose_batch_tile(B, block_b):
    """Batch tile TB (multiple of 8). Prefer one big tile; when splitting, prefer an
    even number of tiles so v7x's two TensorCores get balanced work on the parallel
    batch axis."""
    B8 = _round_up(max(B, 8), 8)
    TB = min(_round_up(block_b, 8), B8)
    num_tiles = -(-B8 // TB)
    if num_tiles % 2 == 1 and B8 >= 16:
        num_tiles += 1
        TB = _round_up(-(-B8 // num_tiles), 8)
    return TB


def mlp_kernel(x_ref, w1_ref, b1_ref, w2_ref, b2_ref, o_ref, h_ref):
    # hidden = relu(x @ W1 + b1): bf16 operands, f32 MXU accumulate, f32 epilogue.
    h = jnp.dot(x_ref[...], w1_ref[...], preferred_element_type=jnp.float32)
    # Store the already-bf16 activation: single bf16 writeback (no f32 store +
    # reload + cast pass) -- numerics unchanged, h is bf16 for the 2nd MXU pass anyway.
    h_ref[...] = jnp.maximum(h + b1_ref[...], 0.0).astype(h_ref.dtype)
    # out = hidden @ W2 + b2
    y = jnp.dot(h_ref[...], w2_ref[...], preferred_element_type=jnp.float32)
    o_ref[...] = (y + b2_ref[...]).astype(o_ref.dtype)


@functools.partial(jax.jit, static_argnames=("block_b",))
def mlp_forward(x, w1, b1, w2, b2, *, block_b=1024):
    """x: (B, 20); w1: (20, 256); b1: (1, 256); w2: (256, 10); b2: (1, 10)."""
    compute_dtype = jnp.bfloat16
    B, K = x.shape
    HID = w1.shape[1]
    N = w2.shape[1]

    K_PAD = _round_up(K, 16)   # 20 -> 32: bf16 sublane packing of the contraction
    N_PAD = _round_up(N, 128)  # 10 -> 128: lane-dense unmasked output stores
    TB = _choose_batch_tile(B, block_b)
    grid = (pl.cdiv(B, TB),)

    # Single fused wrapper op on x: pad K and cast to bf16.  Batch axis is NOT padded.
    x_p = jnp.pad(x, ((0, 0), (0, K_PAD - K))).astype(compute_dtype)
    w1_p = jnp.pad(w1, ((0, K_PAD - K), (0, 0))).astype(compute_dtype)
    w2_p = jnp.pad(w2, ((0, 0), (0, N_PAD - N))).astype(compute_dtype)
    b1_p = b1.astype(jnp.float32)
    b2_p = jnp.pad(b2, ((0, 0), (0, N_PAD - N))).astype(jnp.float32)

    out_dtype = jnp.float32
    cost = pl.CostEstimate(
        flops=2 * B * (K_PAD * HID + HID * N_PAD),
        transcendentals=0,
        bytes_accessed=(x_p.size * x_p.dtype.itemsize
                        + w1_p.size * w1_p.dtype.itemsize
                        + w2_p.size * w2_p.dtype.itemsize
                        + b1_p.size * b1_p.dtype.itemsize
                        + b2_p.size * b2_p.dtype.itemsize
                        + B * N_PAD * jnp.dtype(out_dtype).itemsize),
    )

    out_p = pl.pallas_call(
        mlp_kernel,
        out_shape=jax.ShapeDtypeStruct((B, N_PAD), out_dtype),
        grid_spec=pltpu.PrefetchScalarGridSpec(
            num_scalar_prefetch=0,
            grid=grid,
            in_specs=[
                # x / out tiles stream with the batch grid (double-buffered DMA);
                # weights & biases return block (0,0) -> stay VMEM-resident.
                pl.BlockSpec((TB, K_PAD), lambda i: (i, 0)),
                pl.BlockSpec((K_PAD, HID), lambda i: (0, 0)),
                pl.BlockSpec((1, HID), lambda i: (0, 0)),
                pl.BlockSpec((HID, N_PAD), lambda i: (0, 0)),
                pl.BlockSpec((1, N_PAD), lambda i: (0, 0)),
            ],
            out_specs=pl.BlockSpec((TB, N_PAD), lambda i: (i, 0)),
            scratch_shapes=[pltpu.VMEM((TB, HID), compute_dtype)],
        ),
        compiler_params=pltpu.CompilerParams(
            # Batch axis is independent -> shard across TensorCores on v7x.
            dimension_semantics=("parallel",),
        ),
        cost_estimate=cost,
    )(x_p, w1_p, b1_p, w2_p, b2_p)

    # TODO(synk): downstream consumers could read the padded (B, 128) slab directly
    # and fuse this slice; kept here so the public result matches the module exactly.
    return out_p[:, :N]


def init_params(key, in_dim=20, hidden_dim=256, out_dim=10, dtype=jnp.float32):
    """Deterministic init matching nn.Linear's uniform(-1/sqrt(fan_in), 1/sqrt(fan_in))."""
    k1, k2, k3, k4 = jax.random.split(key, 4)
    bound1 = 1.0 / jnp.sqrt(in_dim)
    bound2 = 1.0 / jnp.sqrt(hidden_dim)
    # Stored as (in, out) == transpose of torch's (out, in) weight layout.
    w1 = jax.random.uniform(k1, (in_dim, hidden_dim), dtype, -bound1, bound1)
    b1 = jax.random.uniform(k2, (1, hidden_dim), dtype, -bound1, bound1)
    w2 = jax.random.uniform(k3, (hidden_dim, out_dim), dtype, -bound2, bound2)
    b2 = jax.random.uniform(k4, (1, out_dim), dtype, -bound2, bound2)
    return w1, b1, w2, b2


def _reference_bf16(x, w1, b1, w2, b2):
    """Plain-JAX mirror of the kernel's bf16-stream / f32-accumulate math."""
    h = jnp.dot(x.astype(jnp.bfloat16), w1.astype(jnp.bfloat16),
                preferred_element_type=jnp.float32)
    h = jnp.maximum(h + b1, 0.0)
    y = jnp.dot(h.astype(jnp.bfloat16), w2.astype(jnp.bfloat16),
                preferred_element_type=jnp.float32)
    return y + b2


if __name__ == "__main__":
    key = jax.random.PRNGKey(0)
    kx, kp, kx2 = jax.random.split(key, 3)

    B, IN, HID, OUT = 8, 20, 256, 10
    x = jax.random.normal(kx, (B, IN), dtype=jnp.float32)
    w1, b1, w2, b2 = init_params(kp, IN, HID, OUT)

    out = jax.block_until_ready(mlp_forward(x, w1, b1, w2, b2))
    assert out.shape == (B, OUT)

    # Exact-semantics check against a plain-JAX mirror of the bf16/f32 math.
    ref_bf16 = _reference_bf16(x, w1, b1, w2, b2)
    assert jnp.allclose(out, ref_bf16, atol=1e-3, rtol=1e-3)
    # Sanity check against the full-f32 PyTorch-equivalent forward.
    ref_f32 = jnp.maximum(x @ w1 + b1, 0.0) @ w2 + b2
    assert jnp.allclose(out, ref_f32, atol=5e-2, rtol=5e-2)

    # Second run with a larger, non-multiple batch: exercises the ragged last block,
    # the even (2-tile) parallel grid, and resident weights across grid steps.
    B2 = 300
    x2 = jax.random.normal(kx2, (B2, IN), dtype=jnp.float32)
    out2 = jax.block_until_ready(mlp_forward(x2, w1, b1, w2, b2))
    assert out2.shape == (B2, OUT)
    assert jnp.allclose(out2, _reference_bf16(x2, w1, b1, w2, b2),
                        atol=1e-3, rtol=1e-3)

    print("KERNEL_OK")
</pallas_src>

<mosaic_0001>
module attributes {stable_mosaic.version = 11 : i64} {
  func.func @mlp_kernel(%arg0: i32, %arg1: memref<8x32xbf16, #tpu.memory_space<vmem>>, %arg2: memref<32x256xbf16, #tpu.memory_space<vmem>>, %arg3: memref<1x256xf32, #tpu.memory_space<vmem>>, %arg4: memref<256x128xbf16, #tpu.memory_space<vmem>>, %arg5: memref<1x128xf32, #tpu.memory_space<vmem>>, %arg6: memref<8x128xf32, #tpu.memory_space<vmem>>, %arg7: memref<8x256xbf16, #tpu.memory_space<vmem>>) attributes {dimension_semantics = [#tpu.dimension_semantics<parallel>], iteration_bounds = array<i64: 1>, scalar_prefetch = 0 : i64, scratch_operands = 1 : i64, tpu.core_type = #tpu.core_type<tc>, window_params = [{transform_indices = @transform_0, window_bounds = array<i64: 8, 32>}, {pipeline_mode = #tpu.pipeline_mode<synchronous>, transform_indices = @transform_1, window_bounds = array<i64: 32, 256>}, {pipeline_mode = #tpu.pipeline_mode<synchronous>, transform_indices = @transform_2, window_bounds = array<i64: 1, 256>}, {pipeline_mode = #tpu.pipeline_mode<synchronous>, transform_indices = @transform_3, window_bounds = array<i64: 256, 128>}, {pipeline_mode = #tpu.pipeline_mode<synchronous>, transform_indices = @transform_4, window_bounds = array<i64: 1, 128>}, {transform_indices = @transform_5, window_bounds = array<i64: 8, 128>}]} {
    %c0 = arith.constant 0 : index
    %c0_0 = arith.constant 0 : index
    %0 = vector.load %arg1[%c0, %c0_0] : memref<8x32xbf16, #tpu.memory_space<vmem>>, vector<8x32xbf16>
    %c0_1 = arith.constant 0 : index
    %c0_2 = arith.constant 0 : index
    %1 = vector.load %arg2[%c0_1, %c0_2] : memref<32x256xbf16, #tpu.memory_space<vmem>>, vector<32x256xbf16>
    %cst = arith.constant dense<0.000000e+00> : vector<8x256xf32>
    %2 = tpu.matmul %0, %1, %cst {dimension_numbers = #tpu.dot_dimension_numbers<[1], [0], [0], [1], [0, 0, 1, 1], [], []>} : vector<8x32xbf16>, vector<32x256xbf16>, vector<8x256xf32> -> vector<8x256xf32>
    %c0_3 = arith.constant 0 : index
    %c0_4 = arith.constant 0 : index
    %3 = vector.load %arg3[%c0_3, %c0_4] : memref<1x256xf32, #tpu.memory_space<vmem>>, vector<1x256xf32>
    %4 = vector.broadcast %3 : vector<1x256xf32> to vector<8x256xf32>
    %5 = arith.addf %2, %4 : vector<8x256xf32>
    %cst_5 = arith.constant 0.000000e+00 : f32
    %6 = vector.broadcast %cst_5 : f32 to vector<8x256xf32>
    %7 = arith.maximumf %5, %6 : vector<8x256xf32>
    %8 = arith.truncf %7 : vector<8x256xf32> to vector<8x256xbf16>
    %c0_6 = arith.constant 0 : index
    %c0_7 = arith.constant 0 : index
    %9 = vector.load %arg7[%c0_6, %c0_7] : memref<8x256xbf16, #tpu.memory_space<vmem>>, vector<8x256xbf16>
    tpu.vector_store %arg7[%c0_6, %c0_7], %8 {strides = array<i32>} : memref<8x256xbf16, #tpu.memory_space<vmem>>, vector<8x256xbf16>,
    %c0_8 = arith.constant 0 : index
    %c0_9 = arith.constant 0 : index
    %10 = vector.load %arg7[%c0_8, %c0_9] : memref<8x256xbf16, #tpu.memory_space<vmem>>, vector<8x256xbf16>
    %c0_10 = arith.constant 0 : index
    %c0_11 = arith.constant 0 : index
    %11 = vector.load %arg4[%c0_10, %c0_11] : memref<256x128xbf16, #tpu.memory_space<vmem>>, vector<256x128xbf16>
    %cst_12 = arith.constant dense<0.000000e+00> : vector<8x128xf32>
    %12 = tpu.matmul %10, %11, %cst_12 {dimension_numbers = #tpu.dot_dimension_numbers<[1], [0], [0], [1], [0, 0, 1, 1], [], []>} : vector<8x256xbf16>, vector<256x128xbf16>, vector<8x128xf32> -> vector<8x128xf32>
    %c0_13 = arith.constant 0 : index
    %c0_14 = arith.constant 0 : index
    %13 = vector.load %arg5[%c0_13, %c0_14] : memref<1x128xf32, #tpu.memory_space<vmem>>, vector<1x128xf32>
    %14 = vector.broadcast %13 : vector<1x128xf32> to vector<8x128xf32>
    %15 = arith.addf %12, %14 : vector<8x128xf32>
    %c0_15 = arith.constant 0 : index
    %c0_16 = arith.constant 0 : index
    %16 = vector.load %arg6[%c0_15, %c0_16] : memref<8x128xf32, #tpu.memory_space<vmem>>, vector<8x128xf32>
    tpu.vector_store %arg6[%c0_15, %c0_16], %15 {strides = array<i32>} : memref<8x128xf32, #tpu.memory_space<vmem>>, vector<8x128xf32>,
    return
  }
  func.func @transform_0(%arg0: i32) -> (i32, i32) {
    %c0_i32 = arith.constant 0 : i32
    %c0_i32_0 = arith.constant 0 : i32
    return %arg0, %c0_i32 : i32, i32
  }
  func.func @transform_1(%arg0: i32) -> (i32, i32) {
    %c0_i32 = arith.constant 0 : i32
    %c0_i32_0 = arith.constant 0 : i32
    %c0_i32_1 = arith.constant 0 : i32
    return %c0_i32, %c0_i32_0 : i32, i32
  }
  func.func @transform_2(%arg0: i32) -> (i32, i32) {
    %c0_i32 = arith.constant 0 : i32
    %c0_i32_0 = arith.constant 0 : i32
    %c0_i32_1 = arith.constant 0 : i32
    return %c0_i32, %c0_i32_0 : i32, i32
  }
  func.func @transform_3(%arg0: i32) -> (i32, i32) {
    %c0_i32 = arith.constant 0 : i32
    %c0_i32_0 = arith.constant 0 : i32
    %c0_i32_1 = arith.constant 0 : i32
    return %c0_i32, %c0_i32_0 : i32, i32
  }
  func.func @transform_4(%arg0: i32) -> (i32, i32) {
    %c0_i32 = arith.constant 0 : i32
    %c0_i32_0 = arith.constant 0 : i32
    %c0_i32_1 = arith.constant 0 : i32
    return %c0_i32, %c0_i32_0 : i32, i32
  }
  func.func @transform_5(%arg0: i32) -> (i32, i32) {
    %c0_i32 = arith.constant 0 : i32
    %c0_i32_0 = arith.constant 0 : i32
    return %arg0, %c0_i32 : i32, i32
  }
}

</mosaic_0001>

<bundles_post_ra>
// kernel: mlp_forward.1
= control target key start
LH: loop header
LB: loop body
LE: loop exit
PB: predicated region body
PF: predicated region fallthrough
CT: control target
= control target key end

     0   :  { %v411_v2 = vmov 0   ;;  %vm59_vm0 = vcmask 261120   ;;  %s524_s0 = inlined_call_operand.vmem [shape: bf16[8,32], index: 0, kind: input, shape index: {}]   ;;  %s525_s1 = inlined_call_operand.vmem [shape: bf16[32,256], index: 1, kind: input, shape index: {}]   ;;  %s526_s2 = inlined_call_operand.vmem [shape: f32[1,256], index: 2, kind: input, shape index: {}]   ;;  %s527_s3 = inlined_call_operand.vmem [shape: bf16[256,128], index: 3, kind: input, shape index: {}]   ;;  %s528_s4 = inlined_call_operand.vmem [shape: f32[1,128], index: 4, kind: input, shape index: {}]   ;;  %s529_s5 = inlined_call_operand.hbm [shape: f32[8,128], index: 5, kind: output, shape index: {}]  }
   0x1   :  { %v365_v0 = vld [vmem:[%s525_s1 + $0x4] ss:$8 sps:$4 sm:$0xff]   ;;  %v367_v1 = vld [vmem:[%s525_s1] ss:$8 sps:$4 sm:$0xff]   ;;  %95 = vmatprep.mubr.bf16.mxu0 %v411_v2  ;;  %v368_v3 = vld [vmem:[%s525_s1 + $0x14] ss:$8 sps:$4 sm:$0xff]  }
   0x2   :  { %63 = vmatprep.subr.bf16.mxu0 %v365_v0  ;;  %v370_v4 = vld [vmem:[%s525_s1 + $0x10] ss:$8 sps:$4 sm:$0xff]   ;;  %v371_v5 = vld [vmem:[%s527_s3 + $0x40] sm:$0xff]   ;;  %v373_v8 = vld [vmem:[%s527_s3 + $0x48] sm:$0xff]  }
   0x3   :  { %64 = vmatpush1.bf16.msra.mxu0 %v367_v1  ;;  %v372_v6 = vld [vmem:[%s527_s3] sm:$0xff]   ;;  %341 = vmatprep.subr.bf16.mxu1 %v371_v5  ;;  %v374_v9 = vld [vmem:[%s527_s3 + $0x8] sm:$0xff]   ;;  %v375_v10 = vld [vmem:[%s527_s3 + $0x50] sm:$0xff]  }
   0x4   :  { %65 = vmatprep.subr.bf16.mxu0 %v368_v3  ;;  %v22_v7 = vld [vmem:[%s524_s0] sm:$0xf]  ;;  %342 = vmatpush3.bf16.msra.mxu1 %v372_v6  ;;  %v376_v11 = vld [vmem:[%s527_s3 + $0x10] sm:$0xff]   ;;  %v377_v12 = vld [vmem:[%s527_s3 + $0x58] sm:$0xff]  }
   0x5   :  { %343 = vmatprep.subr.bf16.mxu1 %v373_v8  ;;  %v378_v13 = vld [vmem:[%s527_s3 + $0x18] sm:$0xff]   ;;  %v379_v14 = vld [vmem:[%s527_s3 + $0x60] sm:$0xff]  }
   0x6   :  { %v380_v15 = vld [vmem:[%s527_s3 + $0x20] sm:$0xff]  }
   0x7   :  { %66 = vmatpush1.bf16.msra.mxu0 %v370_v4 }
   0x8   :  { %344 = vmatpush3.bf16.msra.mxu1 %v374_v9 }
   0x9   :  { %345 = vmatprep.subr.bf16.mxu1 %v375_v10 }
   0xa   :  { %317 = vmatmul.mubr.msk.bf16.vlgmr.msra.gmra.mrb[0].mxu0 %vm59_vm0, %v22_v7 }
   0xc   :  { %346 = vmatpush3.bf16.msra.mxu1 %v376_v11 }
   0xd   :  { %347 = vmatprep.subr.bf16.mxu1 %v377_v12 }
  0x10   :  { %348 = vmatpush3.bf16.msra.mxu1 %v378_v13 }
  0x11   :  { %10 = vsyncpa [#allocation4], 0  ;;  %349 = vmatprep.subr.bf16.mxu1 %v379_v14  ;;  %v381_v16 = vld [vmem:[%s527_s3 + $0x68] sm:$0xff]   ;;  %v383_v18 = vld [vmem:[%s527_s3 + $0x70] sm:$0xff]   ;;  %v29_v22 = vlaneseq }
  0x12   :  { %v382_v17 = vld [vmem:[%s527_s3 + $0x28] sm:$0xff]   ;;  %v384_v19 = vld [vmem:[%s527_s3 + $0x30] sm:$0xff]   ;;  %v385_v20 = vld [vmem:[%s527_s3 + $0x78] sm:$0xff]  }
  0x13   :  { %v386_v21 = vld [vmem:[%s527_s3 + $0x38] sm:$0xff]   ;;  %v30_v23 = vshrl.u32 %v29_v22, 7  ;;  %v27_v25 = vld [vmem:[%s526_s2] sm:$0x3]  ;;  %s412_s2 = smov [#allocation3]  }
  0x14   :  { %350 = vmatpush3.bf16.msra.mxu1 %v380_v15  ;;  %v319_v41 = vld [vmem:[%s528_s4] ss:$0 sm:$0xff]  ;;  %s305_s10 = sshll.u32 %s412_s2, 4  ;;  %s306_s10 = int_to_ptr.vmem [resolvable:$true] %s305_s10 }
  0x15   :  { %351 = vmatprep.subr.bf16.mxu1 %v381_v16  ;;  %v31_v24 = vsub.s32 0, %v30_v23  ;;  %v35_v26 = vsub.s32 1, %v30_v23  ;;  %s387_s11 = scalar_lea.vmem %s306_s10, 128  ;;  %p392_p1 = scmp.lt.s32.totalorder %s306_s10, %s306_s10 }
  0x16   :  { %p388_p0 = scmp.ne.s32.totalorder %s306_s10, %s387_s11  ;;  %p393_p2 = scmp.lt.s32.totalorder %s387_s11, %s387_s11 }
  0x17   :  { %v32_v27 = vrot.slane %v27_v25, %v31_v24  ;;  %v36_v28 = vrot.slane %v27_v25, %v35_v26 }
  0x18   :  { %352 = vmatpush3.bf16.msra.mxu1 %v382_v17  ;;  %p394_p3 = por %p393_p2, %p392_p1 }
  0x19   :  { %353 = vmatprep.subr.bf16.mxu1 %v383_v18 }
  0x1a   :  { %p395_p4 = pnand %p394_p3, %p388_p0 }
  0x1c   :  { %354 = vmatpush3.bf16.msra.mxu1 %v384_v19 }
  0x1d   :  { %355 = vmatprep.subr.bf16.mxu1 %v385_v20 }
  0x20   :  { %356 = vmatpush3.bf16.msra.mxu1 %v386_v21 }
  0xdd   :  { %v97_v29 = vpop.f32.mrb[0].mxu0 }
  0xde   :  { %v98_v30 = vadd.f32 %v97_v29, %v32_v27  ;;  %v99_v31 = vpop.f32.mrb[1].mxu0 }
  0xdf   :  { %v100_v32 = vadd.f32 %v99_v31, %v36_v28  ;;  %v101_v33 = vpop.f32.mrb[2].mxu0 }
  0xe0   :  { %v104_v34 = vmax.f32 %v98_v30, 0.0  ;;  %v102_v35 = vpop.f32.mrb[3].mxu0 }
  0xe1   :  { %v105_v36 = vmax.f32 %v100_v32, 0.0 }
  0xe2   :  { %v339_v38 = vpack.c.bf16 %v104_v34, %v104_v34 }
  0xe3   :  { %v340_v37 = vpack.c.bf16 %v105_v36, %v105_v36 }
  0xe5   :  { %290 = vmatprep.mubr.bf16.mxu1 %v340_v37 }
  0xe6   :  { %291 = vmatmul.mubr.bf16.vlgmr.msra.gmra.mrb[0].mxu1 %v339_v38 }
 0x1b9   :  { %v357_v39 = vpop.f32.mrb[0].mxu1 }
 0x1ba   :  { %v358_v40 = vpop.f32.mrb[1].mxu1 }
 0x1bb   :  { %v359_v42 = vadd.f32 %v358_v40, %v357_v39  ;;  %v360_v43 = vpop.f32.mrb[2].mxu1 }
 0x1bc   :  { %v361_v44 = vpop.f32.mrb[3].mxu1 }
 0x1bd   :  { %v293_v45 = vadd.f32 %v359_v42, %v319_v41 }
 0x1bf   :  { %298 = vst [vmem:[#allocation3] sm:$0xff] %v293_v45 }
 0x1c0   :  { %398 = shalt.err (!%p395_p4)
}
 0x1c1   :  { %s399_s13 = scalar_lea.hbm %s529_s5, 128 }
 0x1c2   :  { %p400_p5 = scmp.ne.s32.totalorder %s529_s5, %s399_s13  ;;  %p403_p6 = scmp.lt.u32.totalorder %s399_s13, %s529_s5 }
 0x1c4   :  { %p405_p7 = pnand %p403_p6, %p400_p5 }
 0x1c6   :  { %408 = shalt.err (!%p405_p7)
}
 0x1c7   :  { %308 = dma.vmem_to_hbm [thread:$0]  %s306_s10, 128, %s529_s5, [#allocation4]  }
 0x1c8   :  { %409 = dma.done.wait [#allocation4], 128  }
 0x1c9   :  { %410 = vsyncadd [#allocation4], 4294967168 }
 0x1ca   :  { %312 = vsyncpa [#allocation4], 1 }

</bundles_post_ra>
